<compile_context>
chip_gen: v5e
topology: v5e:2x2
jax: 0.10.0
libtpu: 0.0.40
codegen_flags: <defaults>
</compile_context>

<pallas_src>
import jax
import jax.numpy as jnp
from jax.experimental import pallas as pl
from jax.experimental.pallas import tpu as pltpu

_EPS = 1e-8            # matches torch.nn.functional.cosine_similarity default
_EPS2 = _EPS * _EPS    # clamp on squared norms (still a normal f32)
_LANE = 128
_SUBLANE = 8


def _cosine_partial_kernel(img_ref, txt_ref, out_ref):
    """One batch tile -> one lane-dense partial-sum block (independent per tile)."""
    x = img_ref[...].astype(jnp.float32)
    y = txt_ref[...].astype(jnp.float32)

    dot = jnp.sum(x * y, axis=-1, keepdims=True)    # (tb, 1)
    nx2 = jnp.sum(x * x, axis=-1, keepdims=True)    # (tb, 1)
    ny2 = jnp.sum(y * y, axis=-1, keepdims=True)    # (tb, 1)

    # torch clamps each norm by eps; sqrt(max(a, eps^2)) == max(sqrt(a), eps)
    # for a >= 0, so one rsqrt on the clamped squared norms is exact and
    # cheaper than 2x sqrt + divide.
    inv = jax.lax.rsqrt(jnp.maximum(nx2, _EPS2) * jnp.maximum(ny2, _EPS2))
    cos = dot * inv                                  # (tb, 1)

    # Per-tile partial sum; this tiny reduce + broadcast is hidden under DMA.
    partial = jnp.sum(cos)
    out_ref[...] = jnp.broadcast_to(partial, out_ref.shape)


def _vmem_capacity_bytes():
    try:
        cap = int(pltpu.get_tpu_info().vmem_capacity_bytes)
        if cap > 0:
            return cap
    except Exception:
        pass
    # Conservative fallback: v7x has the smallest VMEM (64 MiB per TensorCore).
    return 64 * 1024 * 1024


def _pick_batch_tile(batch, feat, itemsize, vmem_budget_bytes):
    """Pick a batch tile: ~4 MiB/input block, 4 buffers total under the budget."""
    # Row granularity so (tb, D) blocks tile cleanly: 8 rows for 32-bit dtypes,
    # 16 for 16-bit, 32 for 8-bit.
    gran = _SUBLANE * max(1, 4 // itemsize)
    row_bytes = feat * itemsize
    # 2 inputs x 2 pipeline buffers must fit the budget.
    rows_by_budget = max(vmem_budget_bytes // (4 * row_bytes), gran)
    # ~4 MiB per input block keeps the HBM DMA saturated while amortizing the
    # ~0.35 us per-grid-step overhead on every generation.
    rows_by_target = max((4 * 1024 * 1024) // row_bytes, gran)
    tb = min(rows_by_budget, rows_by_target)
    tb = max((tb // gran) * gran, gran)
    # Never exceed the (granularity-padded) batch.
    batch_padded = ((batch + gran - 1) // gran) * gran
    return min(tb, batch_padded), gran


def cross_modal_loss(image_ue, text_ue, *, batch_tile=None):
    """Pallas implementation of CrossModalLoss.forward for (B, D) embeddings."""
    assert image_ue.shape == text_ue.shape, "embeddings must share a shape"
    assert image_ue.ndim == 2, "expected (batch, hidden) embeddings"
    B, D = image_ue.shape

    # Keep inputs in their incoming dtype (bf16 welcome: halves HBM traffic);
    # the kernel upcasts to f32 internally.
    if image_ue.dtype != text_ue.dtype:
        common = jnp.promote_types(image_ue.dtype, text_ue.dtype)
        image_ue = image_ue.astype(common)
        text_ue = text_ue.astype(common)
    itemsize = jnp.dtype(image_ue.dtype).itemsize

    vmem_cap = _vmem_capacity_bytes()
    vmem_budget = vmem_cap // 4    # generous headroom for the compiler

    if batch_tile is None:
        tb, gran = _pick_batch_tile(B, D, itemsize, vmem_budget)
    else:
        gran = _SUBLANE * max(1, 4 // itemsize)
        tb = max(((int(batch_tile) + gran - 1) // gran) * gran, gran)

    num_tiles = -(-B // tb)        # cdiv
    b_pad = num_tiles * tb
    if b_pad != B:
        pad = ((0, b_pad - B), (0, 0))
        image_ue = jnp.pad(image_ue, pad)   # zero rows -> cosine contribution 0
        text_ue = jnp.pad(text_ue, pad)

    block_bytes = tb * D * itemsize
    out_block_bytes = _SUBLANE * _LANE * 4
    vmem_limit = int(
        min(vmem_cap,
            max(4 * block_bytes + 2 * out_block_bytes + (4 << 20), 16 << 20)))

    partials = pl.pallas_call(
        _cosine_partial_kernel,
        out_shape=jax.ShapeDtypeStruct((num_tiles, _SUBLANE, _LANE), jnp.float32),
        grid_spec=pltpu.PrefetchScalarGridSpec(
            num_scalar_prefetch=0,
            grid=(num_tiles,),
            in_specs=[
                pl.BlockSpec((tb, D), lambda i: (i, 0)),
                pl.BlockSpec((tb, D), lambda i: (i, 0)),
            ],
            out_specs=pl.BlockSpec((1, _SUBLANE, _LANE), lambda i: (i, 0, 0)),
        ),
        compiler_params=pltpu.CompilerParams(
            # Each tile writes its own output block -> shardable across
            # TensorCores (2 TCs on v7x); no resident accumulator.
            dimension_semantics=("parallel",),
            vmem_limit_bytes=vmem_limit,
        ),
    )(image_ue, text_ue)

    # O(num_tiles) final reduction in plain JAX; divide by the *true* batch.
    return jnp.sum(partials[:, 0, 0]) / jnp.float32(B)


def _reference_loss(image_ue, text_ue):
    x = image_ue.astype(jnp.float32)
    y = text_ue.astype(jnp.float32)
    dot = jnp.sum(x * y, axis=-1)
    nx = jnp.maximum(jnp.linalg.norm(x, axis=-1), _EPS)
    ny = jnp.maximum(jnp.linalg.norm(y, axis=-1), _EPS)
    return jnp.mean(dot / (nx * ny))


if __name__ == "__main__":
    key = jax.random.PRNGKey(0)
    k1, k2, k3, k4 = jax.random.split(key, 4)

    # Small universal-embedding shapes: (batch, hidden).
    B, D = 8, 32
    image_ue = jax.random.normal(k1, (B, D), dtype=jnp.float32)
    text_ue = jax.random.normal(k2, (B, D), dtype=jnp.float32)

    loss = jax.block_until_ready(cross_modal_loss(image_ue, text_ue))
    ref = _reference_loss(image_ue, text_ue)
    assert jnp.allclose(loss, ref, atol=1e-5, rtol=1e-5), (loss, ref)

    # Second check: bf16 inputs + a batch that doesn't divide the tile
    # (exercises the halved-HBM-traffic path and the zero-padding path).
    B2, D2 = 20, 32
    img_bf16 = jax.random.normal(k3, (B2, D2), dtype=jnp.float32).astype(jnp.bfloat16)
    txt_bf16 = jax.random.normal(k4, (B2, D2), dtype=jnp.float32).astype(jnp.bfloat16)
    loss2 = jax.block_until_ready(cross_modal_loss(img_bf16, txt_bf16))
    ref2 = _reference_loss(img_bf16, txt_bf16)
    assert jnp.allclose(loss2, ref2, atol=1e-5, rtol=1e-5), (loss2, ref2)

    print("KERNEL_OK")
</pallas_src>

<mosaic_0001>
module attributes {stable_mosaic.version = 11 : i64} {
  func.func @_cosine_partial_kernel(%arg0: i32, %arg1: memref<8x32xf32, #tpu.memory_space<vmem>>, %arg2: memref<8x32xf32, #tpu.memory_space<vmem>>, %arg3: memref<1x8x128xf32, #tpu.memory_space<vmem>>) attributes {dimension_semantics = [#tpu.dimension_semantics<parallel>], iteration_bounds = array<i64: 1>, scalar_prefetch = 0 : i64, scratch_operands = 0 : i64, tpu.core_type = #tpu.core_type<tc>, window_params = [{transform_indices = @transform_0, window_bounds = array<i64: 8, 32>}, {transform_indices = @transform_1, window_bounds = array<i64: 8, 32>}, {transform_indices = @transform_2, window_bounds = array<i64: 1, 8, 128>}]} {
    %c0 = arith.constant 0 : index
    %c0_0 = arith.constant 0 : index
    %0 = vector.load %arg1[%c0, %c0_0] : memref<8x32xf32, #tpu.memory_space<vmem>>, vector<8x32xf32>
    %c0_1 = arith.constant 0 : index
    %c0_2 = arith.constant 0 : index
    %1 = vector.load %arg2[%c0_1, %c0_2] : memref<8x32xf32, #tpu.memory_space<vmem>>, vector<8x32xf32>
    %2 = arith.mulf %0, %1 : vector<8x32xf32>
    %cst = arith.constant dense<0.000000e+00> : vector<8xf32>
    %3 = vector.multi_reduction <add>, %2, %cst [1] : vector<8x32xf32> to vector<8xf32>
    %4 = vector.shape_cast %3 : vector<8xf32> to vector<8x1xf32>
    %5 = arith.mulf %0, %0 : vector<8x32xf32>
    %cst_3 = arith.constant dense<0.000000e+00> : vector<8xf32>
    %6 = vector.multi_reduction <add>, %5, %cst_3 [1] : vector<8x32xf32> to vector<8xf32>
    %7 = vector.shape_cast %6 : vector<8xf32> to vector<8x1xf32>
    %8 = arith.mulf %1, %1 : vector<8x32xf32>
    %cst_4 = arith.constant dense<0.000000e+00> : vector<8xf32>
    %9 = vector.multi_reduction <add>, %8, %cst_4 [1] : vector<8x32xf32> to vector<8xf32>
    %10 = vector.shape_cast %9 : vector<8xf32> to vector<8x1xf32>
    %cst_5 = arith.constant 1.000000e-16 : f32
    %11 = vector.broadcast %cst_5 : f32 to vector<8x1xf32>
    %12 = arith.maximumf %7, %11 : vector<8x1xf32>
    %cst_6 = arith.constant 1.000000e-16 : f32
    %13 = vector.broadcast %cst_6 : f32 to vector<8x1xf32>
    %14 = arith.maximumf %10, %13 : vector<8x1xf32>
    %15 = arith.mulf %12, %14 : vector<8x1xf32>
    %16 = math.rsqrt %15 : vector<8x1xf32>
    %17 = arith.mulf %4, %16 : vector<8x1xf32>
    %18 = vector.shape_cast %17 : vector<8x1xf32> to vector<1x8x1xf32>
    %cst_7 = arith.constant dense<0.000000e+00> : vector<1xf32>
    %19 = vector.multi_reduction <add>, %18, %cst_7 [1, 2] : vector<1x8x1xf32> to vector<1xf32>
    %20 = vector.shape_cast %19 : vector<1xf32> to vector<1x1x1xf32>
    %21 = vector.extract %20[0, 0, 0] : f32 from vector<1x1x1xf32>
    %22 = vector.broadcast %21 : f32 to vector<1x8x128xf32>
    %c0_8 = arith.constant 0 : index
    %c0_9 = arith.constant 0 : index
    %c0_10 = arith.constant 0 : index
    %23 = vector.load %arg3[%c0_8, %c0_9, %c0_10] : memref<1x8x128xf32, #tpu.memory_space<vmem>>, vector<1x8x128xf32>
    tpu.vector_store %arg3[%c0_8, %c0_9, %c0_10], %22 {strides = array<i32>} : memref<1x8x128xf32, #tpu.memory_space<vmem>>, vector<1x8x128xf32>,
    return
  }
  func.func @transform_0(%arg0: i32) -> (i32, i32) {
    %c0_i32 = arith.constant 0 : i32
    %c0_i32_0 = arith.constant 0 : i32
    return %arg0, %c0_i32 : i32, i32
  }
  func.func @transform_1(%arg0: i32) -> (i32, i32) {
    %c0_i32 = arith.constant 0 : i32
    %c0_i32_0 = arith.constant 0 : i32
    return %arg0, %c0_i32 : i32, i32
  }
  func.func @transform_2(%arg0: i32) -> (i32, i32, i32) {
    %c0_i32 = arith.constant 0 : i32
    %c0_i32_0 = arith.constant 0 : i32
    %c0_i32_1 = arith.constant 0 : i32
    return %arg0, %c0_i32, %c0_i32_0 : i32, i32, i32
  }
}

</mosaic_0001>

<bundles_post_ra>
// kernel: tpu_custom_call.1
= control target key start
LH: loop header
LB: loop body
LE: loop exit
PB: predicated region body
PF: predicated region fallthrough
CT: control target
= control target key end

     0   :  { %7 = vsyncpa [#allocation3], 0  ;;  %s212_s0 = inlined_call_operand.hbm [shape: f32[8,32], index: 0, kind: input, shape index: {}]   ;;  %s213_s1 = inlined_call_operand.hbm [shape: f32[8,32], index: 1, kind: input, shape index: {}]   ;;  %s214_s2 = inlined_call_operand.hbm [shape: f32[1,8,128], index: 2, kind: output, shape index: {}]  }
   0x1   :  { %8 = vsyncpa [#allocation6], 0 }
   0x2   :  { %9 = vsyncpa [#allocation4], 0  ;;  %s15_s11 = sshll.u32 %s212_s0, 4  ;;  %s185_s12 = smov [#allocation2]   ;;  %s16_s11 = int_to_ptr.hbm [resolvable:$true] %s15_s11 }
   0x3   :  { %s17_s13 = sshll.u32 %s185_s12, 4  ;;  %s26_s16 = sshll.u32 %s213_s1, 4  ;;  %s18_s13 = int_to_ptr.vmem [resolvable:$true] %s17_s13  ;;  %s27_s16 = int_to_ptr.hbm [resolvable:$true] %s26_s16 }
   0x4   :  { %20 = dma.hbm_to_vmem [thread:$0]  %s16_s11, 128, %s18_s13, [#allocation3]  }
   0x5   :  { %s186_s17 = smov [#allocation5]  }
   0x6   :  { %s28_s18 = sshll.u32 %s186_s17, 4  ;;  %s29_s18 = int_to_ptr.vmem [resolvable:$true] %s28_s18 }
   0x7   :  { %31 = dma.hbm_to_vmem [thread:$0]  %s27_s16, 128, %s29_s18, [#allocation6]  }
   0x8   :  { %179 = dma.done.wait [#allocation3], 128  }
   0x9   :  { %180 = vsyncadd [#allocation3], 4294967168 }
   0xa   :  { %181 = dma.done.wait [#allocation6], 128  }
   0xb   :  { %182 = vsyncadd [#allocation6], 4294967168  ;;  %v40_v0 = vld [vmem:[#allocation2] sm:$0xff]  ;;  %vm43_vm0 = vcmask 261120   ;;  %v41_v1 = vld [vmem:[#allocation5] sm:$0xff]  ;;  %vm69_vm4 = vcmask 7168  }
   0xc   :  { %v47_v2 = vmul.f32 %v40_v0, %v40_v0  ;;  %v42_v3 = vmul.f32 %v41_v1, %v40_v0  ;;  %v51_v6 = vmul.f32 %v41_v1, %v41_v1  ;;  %s187_s0 = smov [#allocation7]   ;;  %s89_s21 = sshll.u32 %s214_s2, 4  ;;  %s90_s21 = int_to_ptr.hbm [resolvable:$true] %s89_s21 }
   0xd   :  { %s87_s1 = sshll.u32 %s187_s0, 4  ;;  %s88_s1 = int_to_ptr.vmem [resolvable:$true] %s87_s1 }
   0xe   :  { %v48_v4 = vsel %vm43_vm0, %v47_v2, 0.0  ;;  %v44_v5 = vsel %vm43_vm0, %v42_v3, 0.0  ;;  %v52_v7 = vsel %vm43_vm0, %v51_v6, 0.0 }
   0xf   :  { %49 = vadd.xlane.f32.xlu0 %v48_v4  ;;  %45 = vadd.xlane.f32.xlu1 %v44_v5 }
  0x17   :  { %53 = vadd.xlane.f32.xlu0 %v52_v7 }
  0x82   :  { %v50_v8 = vpop.xlane.xlu0 %49  ;;  %v46_v19 = vpop.xlane.xlu1 %45 }
  0x83   :  { %v55_v10 = vmax.f32 %v50_v8, 1e-16 }
  0x8a   :  { %v54_v9 = vpop.xlane.xlu0 %53 }
  0x8b   :  { %v56_v11 = vmax.f32 %v54_v9, 1e-16 }
  0x8d   :  { %v57_v12 = vmul.f32 %v56_v11, %v55_v10 }
  0x8f   :  { %105 = vrsqrt.f32 %v57_v12  ;;  %vm64_vm2 = vweird.f32 %v57_v12 }
  0x95   :  { %v106_v13 = vpop.eup %105 }
  0x96   :  { %v59_v14 = vmul.f32 %v106_v13, %v57_v12  ;;  %vm65_vm1 = vweird.f32 %v106_v13 }
  0x97   :  { %vm66_vm3 = vmor %vm64_vm2, %vm65_vm1 }
  0x98   :  { %v60_v15 = vmul.f32 %v106_v13, %v59_v14 }
  0x9a   :  { %v61_v16 = vmul.f32 0.5, %v60_v15 }
  0x9c   :  { %v62_v17 = vsub.f32 1.5, %v61_v16 }
  0x9e   :  { %v63_v18 = vmul.f32 %v106_v13, %v62_v17 }
  0xa0   :  { %v67_v20 = vsel %vm66_vm3, %v106_v13, %v63_v18 }
  0xa1   :  { %v68_v21 = vmul.f32 %v67_v20, %v46_v19 }
  0xa3   :  { %v70_v22 = vsel %vm69_vm4, %v68_v21, 0.0 }
  0xa4   :  { %71 = vadd.xlane.f32.xlu1 %v70_v22 }
 0x117   :  { %v72_v23 = vpop.xlane.xlu1 %71 }
 0x118   :  { %v73_v24 = vrot.slane %v72_v23, 4 }
 0x11a   :  { %v74_v25 = vadd.f32 %v73_v24, %v72_v23 }
 0x11c   :  { %v75_v26 = vrot.slane %v74_v25, 2 }
 0x11e   :  { %v76_v27 = vadd.f32 %v75_v26, %v74_v25 }
 0x120   :  { %v77_v28 = vrot.slane %v76_v27, 1 }
 0x122   :  { %v78_v29 = vadd.f32 %v77_v28, %v76_v27 }
 0x124   :  { %100 = vpush %v78_v29 }
 0x155   :  { %s101_s22 = spop %100 }
 0x156   :  { %v80_v30 = vstv %s101_s22 }
 0x157   :  { %81 = vst [vmem:[#allocation7] sm:$0xff] %v80_v30 }
 0x158   :  { %92 = dma.vmem_to_hbm [thread:$0]  %s88_s1, 128, %s90_s21, [#allocation4]  }
 0x159   :  { %183 = dma.done.wait [#allocation4], 128  }
 0x15a   :  { %184 = vsyncadd [#allocation4], 4294967168 }
 0x15b   :  { %97 = vsyncpa [#allocation3], 1 }
 0x15c   :  { %98 = vsyncpa [#allocation6], 1 }
 0x15d   :  { %99 = vsyncpa [#allocation4], 1 }

</bundles_post_ra>
